<compile_context>
chip_gen: v7x
topology: tpu7x:2x2x1
jax: 0.10.0
libtpu: 0.0.40
codegen_flags: <defaults>
</compile_context>

<pallas_src>
import functools

import jax
import jax.numpy as jnp
from jax.experimental import pallas as pl
from jax.experimental.pallas import tpu as pltpu

_LANES = 128
_MAX_UNROLL_CHUNKS = 32
_SINGLE_MAX_BLOCK_BYTES = 8 << 20     # per-batch (C, HW) block budget (x2 in + x2 out buffers)
_TILED_TARGET_TILE_BYTES = 4 << 20    # per-tile (C, T) budget for the two-pass path


# --------------------------------------------------------------------------
# Shared in-kernel helpers
# --------------------------------------------------------------------------
def _chunked_sum_max(xf, width):
    """Sum and max over the last axis of (C, width) f32, VPU-chunked."""
    n_chunks = width // _LANES
    if width % _LANES == 0 and n_chunks > 1 and n_chunks <= _MAX_UNROLL_CHUNKS:
        acc_s = xf[:, 0:_LANES]
        acc_m = xf[:, 0:_LANES]
        for k in range(1, n_chunks):            # static unroll, pure VPU add/max
            c = xf[:, k * _LANES:(k + 1) * _LANES]
            acc_s = acc_s + c
            acc_m = jnp.maximum(acc_m, c)
    else:
        acc_s = xf
        acc_m = xf
    return (jnp.sum(acc_s, axis=-1, keepdims=True),
            jnp.max(acc_m, axis=-1, keepdims=True))


def _attention_from_pooled(avg, mx, w13, b13, w4, b4):
    """c1/c2/c3(+ReLU) -> c4(+sigmoid) on both pooled columns, then
    sigmoid(avg_branch + max_branch).  avg, mx: (C, 1) f32.  Returns (C, 1)."""
    p = jnp.concatenate([avg, mx], axis=1)                                 # (C, 2)
    h = jnp.maximum(
        jnp.dot(w13, p, preferred_element_type=jnp.float32) + b13, 0.0)    # (3cr, 2)
    z = jax.nn.sigmoid(
        jnp.dot(w4, h, preferred_element_type=jnp.float32) + b4)           # (C, 2)
    return jax.nn.sigmoid(z[:, 0:1] + z[:, 1:2])                           # (C, 1)


# --------------------------------------------------------------------------
# Kernels
# --------------------------------------------------------------------------
def _make_fused_kernel(C, HW):
    """Single-pass: pool + attention MLP + gating, one (C, HW) block/batch."""
    def kernel(x_ref, w13_ref, b13_ref, w4_ref, b4_ref, o_ref):
        x = x_ref[...]                                  # (C, HW)
        xf = x.astype(jnp.float32)
        s, m = _chunked_sum_max(xf, HW)
        avg = s * jnp.float32(1.0 / HW)                 # AdaptiveAvgPool2d(1)
        att = _attention_from_pooled(avg, m, w13_ref[...], b13_ref[...],
                                     w4_ref[...], b4_ref[...])
        o_ref[...] = (x * att.astype(x.dtype)).astype(o_ref.dtype)
    return kernel


def _make_pool_att_kernel(C, HW, T):
    """Two-pass path, pass 1: accumulate sum/max over HW tiles, finalize MLP."""
    def kernel(x_ref, w13_ref, b13_ref, w4_ref, b4_ref, att_ref, sum_sc, max_sc):
        t = pl.program_id(1)

        @pl.when(t == 0)
        def _():
            sum_sc[...] = jnp.zeros((C, 1), jnp.float32)
            max_sc[...] = jnp.full((C, 1), -jnp.inf, jnp.float32)

        xf = x_ref[...].astype(jnp.float32)             # (C, T)
        s, m = _chunked_sum_max(xf, T)
        sum_sc[...] = sum_sc[...] + s
        max_sc[...] = jnp.maximum(max_sc[...], m)

        @pl.when(t == pl.num_programs(1) - 1)
        def _():
            avg = sum_sc[...] * jnp.float32(1.0 / HW)
            att_ref[...] = _attention_from_pooled(
                avg, max_sc[...], w13_ref[...], b13_ref[...],
                w4_ref[...], b4_ref[...])
    return kernel


def _gating_kernel(x_ref, att_ref, o_ref):
    """Two-pass path, pass 2: lane-dense gating multiply."""
    x = x_ref[...]                                      # (C, T)
    o_ref[...] = (x * att_ref[...].astype(x.dtype)).astype(o_ref.dtype)


# --------------------------------------------------------------------------
# Host-side helpers
# --------------------------------------------------------------------------
def pack_params(params):
    """One-time weight packing (do at model init, not per forward).

    Center-tap weight slabs:
      w13_t : (3*cr, C)  rows = [w1 | w2 | w3] center taps
      b13   : (3*cr, 1)
      w4_t  : (C, 3*cr)  center tap of c4
      b4    : (C, 1)
    """
    w13_t = jnp.concatenate(
        [params["w1"][:, :, 1, 1],
         params["w2"][:, :, 1, 1],
         params["w3"][:, :, 1, 1]], axis=0)
    b13 = jnp.concatenate(
        [params["b1"], params["b2"], params["b3"]]).reshape(-1, 1)
    w4_t = params["w4"][:, :, 1, 1]
    b4 = params["b4"].reshape(-1, 1)
    return {"w13_t": w13_t, "b13": b13, "w4_t": w4_t, "b4": b4}


def _weight_bytes(packed):
    return sum(int(v.size) * jnp.dtype(v.dtype).itemsize for v in packed.values())


def _vmem_limit(block_bytes, weight_bytes):
    # double-buffered input + output blocks + weights + headroom, clamped to
    # stay under the v7x 64 MiB physical VMEM.
    return int(min(max(4 * block_bytes + 4 * weight_bytes + (4 << 20), 16 << 20),
                   64 << 20))


def _pick_hw_tile(C, HW, itemsize):
    """Largest multiple of 128 that divides HW and fits the tile budget."""
    max_t = max(_LANES,
                (_TILED_TARGET_TILE_BYTES // (C * itemsize)) // _LANES * _LANES)
    best = _LANES
    t = _LANES
    while t <= min(HW, max_t):
        if HW % t == 0:
            best = t
        t += _LANES
    return best


# --------------------------------------------------------------------------
# Public entry point
# --------------------------------------------------------------------------
@functools.partial(jax.jit, static_argnames=("force_tiled", "hw_tile"))
def laplacian_attention(x, packed, force_tiled=False, hw_tile=None):
    """x: (B, C, H, W); packed: output of pack_params()."""
    B, C, H, W = x.shape
    HW = H * W
    x3 = x.reshape(B, C, HW)
    cr3 = packed["w13_t"].shape[0]                 # 3 * (channel // reduction)
    itemsize = jnp.dtype(x.dtype).itemsize
    block_bytes = C * HW * itemsize
    wbytes = _weight_bytes(packed)

    tiled_possible = (HW % _LANES == 0) and (HW > _LANES)
    use_tiled = tiled_possible and (force_tiled
                                    or block_bytes > _SINGLE_MAX_BLOCK_BYTES)
    # TODO(synk): very large C*HW with HW not a multiple of 128 still takes the
    # single-block path (a masked spatial tiling would be needed to split it).

    w_specs = [
        pl.BlockSpec((cr3, C), lambda *_: (0, 0)),     # w13_t (VMEM-resident)
        pl.BlockSpec((cr3, 1), lambda *_: (0, 0)),     # b13
        pl.BlockSpec((C, cr3), lambda *_: (0, 0)),     # w4_t
        pl.BlockSpec((C, 1), lambda *_: (0, 0)),       # b4
    ]
    weights = (packed["w13_t"], packed["b13"], packed["w4_t"], packed["b4"])

    if not use_tiled:
        # ---- fused single-pass: read x once, write out once ----
        xo_spec = pl.BlockSpec((None, C, HW), lambda b: (b, 0, 0))
        out = pl.pallas_call(
            _make_fused_kernel(C, HW),
            out_shape=jax.ShapeDtypeStruct((B, C, HW), x.dtype),
            grid=(B,),
            in_specs=[xo_spec] + w_specs,
            out_specs=xo_spec,
            compiler_params=pltpu.CompilerParams(
                dimension_semantics=("parallel",),
                vmem_limit_bytes=_vmem_limit(block_bytes, wbytes)),
        )(x3, *weights)
        return out.reshape(B, C, H, W)

    # ---- two-pass spatially tiled path ----
    if hw_tile is not None:
        assert hw_tile % _LANES == 0 and HW % hw_tile == 0, "bad hw_tile"
        T = hw_tile
    else:
        T = _pick_hw_tile(C, HW, itemsize)
    n_t = HW // T
    tile_bytes = C * T * itemsize
    vmem = _vmem_limit(tile_bytes, wbytes)

    x_tile_spec = pl.BlockSpec((None, C, T), lambda b, t: (b, 0, t))
    att_spec = pl.BlockSpec((None, C, 1), lambda b, t: (b, 0, 0))

    # Pass 1: pooled sums/maxes accumulated in scratch; attention on last tile.
    att = pl.pallas_call(
        _make_pool_att_kernel(C, HW, T),
        out_shape=jax.ShapeDtypeStruct((B, C, 1), jnp.float32),
        grid=(B, n_t),
        in_specs=[x_tile_spec] + w_specs,
        out_specs=att_spec,
        scratch_shapes=[pltpu.VMEM((C, 1), jnp.float32),
                        pltpu.VMEM((C, 1), jnp.float32)],
        compiler_params=pltpu.CompilerParams(
            dimension_semantics=("parallel", "arbitrary"),
            vmem_limit_bytes=vmem),
    )(x3, *weights)

    # Pass 2: gating multiply, independent tiles.
    out = pl.pallas_call(
        _gating_kernel,
        out_shape=jax.ShapeDtypeStruct((B, C, HW), x.dtype),
        grid=(B, n_t),
        in_specs=[x_tile_spec, att_spec],
        out_specs=x_tile_spec,
        compiler_params=pltpu.CompilerParams(
            dimension_semantics=("parallel", "parallel"),
            vmem_limit_bytes=vmem),
    )(x3, att)
    return out.reshape(B, C, H, W)


# --------------------------------------------------------------------------
# Pure-JAX reference (center-tap reduction of the dilated convs is exact for
# 1x1 inputs with padding == dilation) and parameter init
# --------------------------------------------------------------------------
def laplacian_attention_ref(x, params):
    avg = jnp.mean(x, axis=(2, 3))
    mx = jnp.max(x, axis=(2, 3))

    def lin(p, w, b):
        return p @ jnp.transpose(w[:, :, 1, 1]) + b

    def branch(p):
        h1 = jax.nn.relu(lin(p, params["w1"], params["b1"]))
        h2 = jax.nn.relu(lin(p, params["w2"], params["b2"]))
        h3 = jax.nn.relu(lin(p, params["w3"], params["b3"]))
        h = jnp.concatenate([h1, h2, h3], axis=1)
        return jax.nn.sigmoid(lin(h, params["w4"], params["b4"]))

    att = jax.nn.sigmoid(branch(avg) + branch(mx))
    return x * att[:, :, None, None]


def init_params(key, channel, reduction):
    cr = channel // reduction
    ks = jax.random.split(key, 8)
    s = 0.1
    return {
        "w1": s * jax.random.normal(ks[0], (cr, channel, 3, 3), jnp.float32),
        "b1": s * jax.random.normal(ks[1], (cr,), jnp.float32),
        "w2": s * jax.random.normal(ks[2], (cr, channel, 3, 3), jnp.float32),
        "b2": s * jax.random.normal(ks[3], (cr,), jnp.float32),
        "w3": s * jax.random.normal(ks[4], (cr, channel, 3, 3), jnp.float32),
        "b3": s * jax.random.normal(ks[5], (cr,), jnp.float32),
        "w4": s * jax.random.normal(ks[6], (channel, 3 * cr, 3, 3), jnp.float32),
        "b4": s * jax.random.normal(ks[7], (channel,), jnp.float32),
    }


if __name__ == "__main__":
    key = jax.random.PRNGKey(0)
    kx, kp = jax.random.split(key)

    B, C, H, W = 2, 64, 16, 16
    reduction = 16
    x = jax.random.normal(kx, (B, C, H, W), jnp.float32)
    params = init_params(kp, C, reduction)

    packed = pack_params(params)                 # one-time weight packing
    packed = jax.tree_util.tree_map(jax.block_until_ready, packed)

    ref = laplacian_attention_ref(x, params)

    # Fused single-pass path (the one used for typical sizes).
    out = jax.block_until_ready(laplacian_attention(x, packed))
    assert out.shape == (B, C, H, W)
    assert jnp.allclose(out, ref, rtol=1e-5, atol=1e-5), "single-pass mismatch"

    # Two-pass tiled path (VMEM-overflow fallback) — force it on the small
    # input with a 128-wide tile so the cross-tile accumulation is validated.
    out_t = jax.block_until_ready(
        laplacian_attention(x, packed, force_tiled=True, hw_tile=128))
    assert jnp.allclose(out_t, ref, rtol=1e-5, atol=1e-5), "tiled-path mismatch"

    print("KERNEL_OK")
</pallas_src>

<mosaic_0001>
module attributes {stable_mosaic.version = 11 : i64} {
  func.func @kernel(%arg0: i32, %arg1: memref<1x64x256xf32, #tpu.memory_space<vmem>>, %arg2: memref<12x64xf32, #tpu.memory_space<vmem>>, %arg3: memref<12x1xf32, #tpu.memory_space<vmem>>, %arg4: memref<64x12xf32, #tpu.memory_space<vmem>>, %arg5: memref<64x1xf32, #tpu.memory_space<vmem>>, %arg6: memref<1x64x256xf32, #tpu.memory_space<vmem>>) attributes {dimension_semantics = [#tpu.dimension_semantics<parallel>], iteration_bounds = array<i64: 2>, scalar_prefetch = 0 : i64, scratch_operands = 0 : i64, tpu.core_type = #tpu.core_type<tc>, window_params = [{transform_indices = @transform_0, window_bounds = array<i64: 1, 64, 256>}, {pipeline_mode = #tpu.pipeline_mode<synchronous>, transform_indices = @transform_1, window_bounds = array<i64: 12, 64>}, {pipeline_mode = #tpu.pipeline_mode<synchronous>, transform_indices = @transform_2, window_bounds = array<i64: 12, 1>}, {pipeline_mode = #tpu.pipeline_mode<synchronous>, transform_indices = @transform_3, window_bounds = array<i64: 64, 12>}, {pipeline_mode = #tpu.pipeline_mode<synchronous>, transform_indices = @transform_4, window_bounds = array<i64: 64, 1>}, {transform_indices = @transform_5, window_bounds = array<i64: 1, 64, 256>}]} {
    %c0 = arith.constant 0 : index
    %c0_0 = arith.constant 0 : index
    %c0_1 = arith.constant 0 : index
    %0 = vector.load %arg1[%c0, %c0_0, %c0_1] : memref<1x64x256xf32, #tpu.memory_space<vmem>>, vector<1x64x256xf32>
    %1 = vector.shape_cast %0 : vector<1x64x256xf32> to vector<64x256xf32>
    %2 = vector.extract_strided_slice %1 {offsets = [0, 0], sizes = [64, 128], strides = [1, 1]} : vector<64x256xf32> to vector<64x128xf32>
    %3 = vector.extract_strided_slice %1 {offsets = [0, 0], sizes = [64, 128], strides = [1, 1]} : vector<64x256xf32> to vector<64x128xf32>
    %4 = vector.extract_strided_slice %1 {offsets = [0, 128], sizes = [64, 128], strides = [1, 1]} : vector<64x256xf32> to vector<64x128xf32>
    %5 = arith.addf %2, %4 : vector<64x128xf32>
    %6 = arith.maximumf %3, %4 : vector<64x128xf32>
    %cst = arith.constant dense<0.000000e+00> : vector<64xf32>
    %7 = vector.multi_reduction <add>, %5, %cst [1] : vector<64x128xf32> to vector<64xf32>
    %8 = vector.shape_cast %7 : vector<64xf32> to vector<64x1xf32>
    %cst_2 = arith.constant dense<0xFF800000> : vector<64xf32>
    %9 = vector.multi_reduction <maximumf>, %6, %cst_2 [1] : vector<64x128xf32> to vector<64xf32>
    %10 = vector.shape_cast %9 : vector<64xf32> to vector<64x1xf32>
    %cst_3 = arith.constant 3.906250e-03 : f32
    %11 = vector.broadcast %cst_3 : f32 to vector<64x1xf32>
    %12 = arith.mulf %8, %11 : vector<64x1xf32>
    %c0_4 = arith.constant 0 : index
    %c0_5 = arith.constant 0 : index
    %13 = vector.load %arg2[%c0_4, %c0_5] : memref<12x64xf32, #tpu.memory_space<vmem>>, vector<12x64xf32>
    %c0_6 = arith.constant 0 : index
    %c0_7 = arith.constant 0 : index
    %14 = vector.load %arg3[%c0_6, %c0_7] : memref<12x1xf32, #tpu.memory_space<vmem>>, vector<12x1xf32>
    %c0_8 = arith.constant 0 : index
    %c0_9 = arith.constant 0 : index
    %15 = vector.load %arg4[%c0_8, %c0_9] : memref<64x12xf32, #tpu.memory_space<vmem>>, vector<64x12xf32>
    %c0_10 = arith.constant 0 : index
    %c0_11 = arith.constant 0 : index
    %16 = vector.load %arg5[%c0_10, %c0_11] : memref<64x1xf32, #tpu.memory_space<vmem>>, vector<64x1xf32>
    %17 = tpu.concatenate %12, %10 in 1 : vector<64x1xf32>, vector<64x1xf32> -> vector<64x2xf32>
    %cst_12 = arith.constant dense<0.000000e+00> : vector<12x2xf32>
    %18 = tpu.matmul %13, %17, %cst_12 {dimension_numbers = #tpu.dot_dimension_numbers<[1], [0], [0], [1], [0, 0, 1, 1], [], []>} : vector<12x64xf32>, vector<64x2xf32>, vector<12x2xf32> -> vector<12x2xf32>
    %19 = vector.broadcast %14 : vector<12x1xf32> to vector<12x2xf32>
    %20 = arith.addf %18, %19 : vector<12x2xf32>
    %cst_13 = arith.constant 0.000000e+00 : f32
    %21 = vector.broadcast %cst_13 : f32 to vector<12x2xf32>
    %22 = arith.maximumf %20, %21 : vector<12x2xf32>
    %cst_14 = arith.constant dense<0.000000e+00> : vector<64x2xf32>
    %23 = tpu.matmul %15, %22, %cst_14 {dimension_numbers = #tpu.dot_dimension_numbers<[1], [0], [0], [1], [0, 0, 1, 1], [], []>} : vector<64x12xf32>, vector<12x2xf32>, vector<64x2xf32> -> vector<64x2xf32>
    %24 = vector.broadcast %16 : vector<64x1xf32> to vector<64x2xf32>
    %25 = arith.addf %23, %24 : vector<64x2xf32>
    %26 = arith.negf %25 : vector<64x2xf32>
    %27 = math.exp %26 : vector<64x2xf32>
    %cst_15 = arith.constant 1.000000e+00 : f32
    %28 = vector.broadcast %cst_15 : f32 to vector<64x2xf32>
    %29 = arith.addf %28, %27 : vector<64x2xf32>
    %30 = arith.divf %28, %29 : vector<64x2xf32>
    %31 = vector.extract_strided_slice %30 {offsets = [0, 0], sizes = [64, 1], strides = [1, 1]} : vector<64x2xf32> to vector<64x1xf32>
    %32 = vector.extract_strided_slice %30 {offsets = [0, 1], sizes = [64, 1], strides = [1, 1]} : vector<64x2xf32> to vector<64x1xf32>
    %33 = arith.addf %31, %32 : vector<64x1xf32>
    %34 = arith.negf %33 : vector<64x1xf32>
    %35 = math.exp %34 : vector<64x1xf32>
    %cst_16 = arith.constant 1.000000e+00 : f32
    %36 = vector.broadcast %cst_16 : f32 to vector<64x1xf32>
    %37 = arith.addf %36, %35 : vector<64x1xf32>
    %38 = arith.divf %36, %37 : vector<64x1xf32>
    %39 = vector.broadcast %38 : vector<64x1xf32> to vector<64x256xf32>
    %40 = arith.mulf %1, %39 : vector<64x256xf32>
    %c0_17 = arith.constant 0 : index
    %c0_18 = arith.constant 0 : index
    %c0_19 = arith.constant 0 : index
    %41 = vector.load %arg6[%c0_17, %c0_18, %c0_19] : memref<1x64x256xf32, #tpu.memory_space<vmem>>, vector<1x64x256xf32>
    %42 = vector.shape_cast %41 : vector<1x64x256xf32> to vector<64x256xf32>
    %43 = vector.shape_cast %40 : vector<64x256xf32> to vector<1x64x256xf32>
    tpu.vector_store %arg6[%c0_17, %c0_18, %c0_19], %43 {strides = array<i32>} : memref<1x64x256xf32, #tpu.memory_space<vmem>>, vector<1x64x256xf32>,
    return
  }
  func.func @transform_0(%arg0: i32) -> (i32, i32, i32) {
    %c0_i32 = arith.constant 0 : i32
    %c0_i32_0 = arith.constant 0 : i32
    %c0_i32_1 = arith.constant 0 : i32
    return %arg0, %c0_i32, %c0_i32_0 : i32, i32, i32
  }
  func.func @transform_1(%arg0: i32) -> (i32, i32) {
    %c0_i32 = arith.constant 0 : i32
    %c0_i32_0 = arith.constant 0 : i32
    %c0_i32_1 = arith.constant 0 : i32
    return %c0_i32, %c0_i32_0 : i32, i32
  }
  func.func @transform_2(%arg0: i32) -> (i32, i32) {
    %c0_i32 = arith.constant 0 : i32
    %c0_i32_0 = arith.constant 0 : i32
    %c0_i32_1 = arith.constant 0 : i32
    return %c0_i32, %c0_i32_0 : i32, i32
  }
  func.func @transform_3(%arg0: i32) -> (i32, i32) {
    %c0_i32 = arith.constant 0 : i32
    %c0_i32_0 = arith.constant 0 : i32
    %c0_i32_1 = arith.constant 0 : i32
    return %c0_i32, %c0_i32_0 : i32, i32
  }
  func.func @transform_4(%arg0: i32) -> (i32, i32) {
    %c0_i32 = arith.constant 0 : i32
    %c0_i32_0 = arith.constant 0 : i32
    %c0_i32_1 = arith.constant 0 : i32
    return %c0_i32, %c0_i32_0 : i32, i32
  }
  func.func @transform_5(%arg0: i32) -> (i32, i32, i32) {
    %c0_i32 = arith.constant 0 : i32
    %c0_i32_0 = arith.constant 0 : i32
    %c0_i32_1 = arith.constant 0 : i32
    return %arg0, %c0_i32, %c0_i32_0 : i32, i32, i32
  }
}

</mosaic_0001>

<bundles_post_ra>
// kernel: laplacian_attention.1
= control target key start
LH: loop header
LB: loop body
LE: loop exit
PB: predicated region body
PF: predicated region fallthrough
CT: control target
= control target key end

     0   :  { %s1092_s18 = smov 0   ;;  %s1310_s0 = inlined_call_operand.vmem [shape: f32[2,64,256], index: 0, kind: input, shape index: {}]   ;;  %s1311_s1 = inlined_call_operand.vmem [shape: f32[12,64], index: 1, kind: input, shape index: {}]   ;;  %s1312_s2 = inlined_call_operand.vmem [shape: f32[12,1], index: 2, kind: input, shape index: {}]   ;;  %s1313_s3 = inlined_call_operand.vmem [shape: f32[64,12], index: 3, kind: input, shape index: {}]   ;;  %s1314_s4 = inlined_call_operand.vmem [shape: f32[64,1], index: 4, kind: input, shape index: {}]   ;;  %s1315_s5 = inlined_call_operand.vmem [shape: f32[2,64,256], index: 5, kind: output, shape index: {}]  }
   0x1 LB: > { %s857_s19 = sadd.s32 4294967295, %s1057_s18   ;;  %p861_p0 = scmp.ge.s32.totalorder %s1057_s18, 1  ;;  %s1057_s18 = sphi %s1092_s18, %s15_s18  }
   0x2   : > { %p187_p1 = scmp.lt.s32.totalorder %s1057_s18, 3 }
   0x4   : > { %p188_p2 = pnand %p861_p0, %p187_p1 }
   0x5   : > { %p215_p3 = scmp.lt.s32.totalorder (!%p188_p2), %s857_s19, 1  ;;  %v297_v32 = vld [vmem:[%s1311_s1] sm:$0xff] (!%p188_p2)  ;;  %vm336_vm0 = vcmask (!%p188_p2), 523264   ;;  %v300_v33 = vld [vmem:[%s1312_s2 + $0x8] sm:$0xf] (!%p188_p2)  ;;  %v1059_v34 = vmov (!%p188_p2), 0  }
   0x6   : > { %191 = sbr.rel (%p188_p2) target bundleno = 948 (0x3b4), region = 40  ;;  %933 = vmatprep.mubr.msk.f32.mxu0 (!%p188_p2), %vm336_vm0, %v297_v32  ;;  %986 = vset.pattern.permute.xlu1 (!%p188_p2), %v1059_v34  ;;  %v299_v35 = vld [vmem:[%s1312_s2] sm:$0xff] (!%p188_p2)  ;;  %v316_v37 = vld [vmem:[%s1314_s4 + $0x38] sm:$0xff] (!%p188_p2)  ;;  %v310_v38 = vld [vmem:[%s1314_s4 + $0x8] sm:$0xff] (!%p188_p2)  ;;  %vm317_vm1 = vcmask (!%p188_p2), 7168   ;;  %vm460_vm2 = vcmask (!%p188_p2), 97280  }
   0x7   : > { %985 = vset.pattern.permute.xlu0 (!%p188_p2), %v1059_v34  ;;  %v309_v36 = vld [vmem:[%s1314_s4] sm:$0xff] (!%p188_p2)  ;;  %v311_v39 = vld [vmem:[%s1314_s4 + $0x10] sm:$0xff] (!%p188_p2)  ;;  %v312_v40 = vld [vmem:[%s1314_s4 + $0x18] sm:$0xff] (!%p188_p2)  ;;  %vm485_vm3 = vcmask (!%p188_p2), 1043456   ;;  %vm1060_vm4 = vmmov (!%p188_p2), 1   ;;  %s1061_s17 = smov (!%p188_p2), 127  }
   0x8   : > { %v313_v41 = vld [vmem:[%s1314_s4 + $0x20] sm:$0xff] (!%p188_p2)  ;;  %v314_v42 = vld [vmem:[%s1314_s4 + $0x28] sm:$0xff] (!%p188_p2)  ;;  %v315_v43 = vld [vmem:[%s1314_s4 + $0x30] sm:$0xff] (!%p188_p2) }
   0x9   : > { %v298_v32 = vld [vmem:[%s1311_s1 + $0x8] sm:$0xf] (!%p188_p2)  ;;  %vm969_vm5 = vmpackc.low (!%p188_p2), %vm485_vm3, %vm1060_vm4 }
   0xd   : > { %s1317_s19 = smov (!%p215_p3, %s857_s19), 1 }
   0xe   : > { %s895_s20 = sshll.u32 %s1317_s19, 7 }
   0xf   : > { %s1108_s23 = scalar_lea.vmem %s1310_s0, %s895_s20 }
  0x10   : > { %v1111_v0 = vld [vmem:[%s1108_s23] sm:$0xff]  ;;  %v1114_v1 = vld [vmem:[%s1108_s23 + $0x8] sm:$0xff]  ;;  %v1117_v2 = vld [vmem:[%s1108_s23 + $0x10] sm:$0xff] }
  0x11   : > { %v249_v3 = vmax.f32 %v1111_v0, %v1114_v1  ;;  %v241_v4 = vadd.f32 %v1114_v1, %v1111_v0  ;;  %v1124_v5 = vld [vmem:[%s1108_s23 + $0x18] sm:$0xff]  ;;  %v1131_v8 = vld [vmem:[%s1108_s23 + $0x30] sm:$0xff]  ;;  %v1137_v10 = vld [vmem:[%s1108_s23 + $0x20] sm:$0xff] }
  0x12   : > { %v250_v6 = vmax.f32 %v1117_v2, %v1124_v5  ;;  %v242_v7 = vadd.f32 %v1124_v5, %v1117_v2  ;;  %v1134_v9 = vld [vmem:[%s1108_s23 + $0x38] sm:$0xff]  ;;  %v1140_v11 = vld [vmem:[%s1108_s23 + $0x28] sm:$0xff]  ;;  %v1151_v16 = vld [vmem:[%s1108_s23 + $0x50] sm:$0xff] }
  0x13   : > { %273 = vmax.xlane.f32.xlu1 %v249_v3  ;;  %257 = vadd.xlane.f32.xlu0 %v241_v4  ;;  %v244_v12 = vadd.f32 %v1134_v9, %v1131_v8  ;;  %v243_v13 = vadd.f32 %v1140_v11, %v1137_v10  ;;  %v252_v14 = vmax.f32 %v1131_v8, %v1134_v9  ;;  %v1154_v17 = vld [vmem:[%s1108_s23 + $0x58] sm:$0xff]  ;;  %v1157_v18 = vld [vmem:[%s1108_s23 + $0x40] sm:$0xff]  ;;  %v1160_v19 = vld [vmem:[%s1108_s23 + $0x48] sm:$0xff] }
  0x14   : > { %v251_v15 = vmax.f32 %v1137_v10, %v1140_v11  ;;  %v246_v20 = vadd.f32 %v1154_v17, %v1151_v16  ;;  %v245_v21 = vadd.f32 %v1160_v19, %v1157_v18  ;;  %v254_v22 = vmax.f32 %v1151_v16, %v1154_v17  ;;  %v1171_v24 = vld [vmem:[%s1108_s23 + $0x70] sm:$0xff]  ;;  %v1174_v25 = vld [vmem:[%s1108_s23 + $0x78] sm:$0xff]  ;;  %v1177_v26 = vld [vmem:[%s1108_s23 + $0x60] sm:$0xff] }
  0x15   : > { %v253_v23 = vmax.f32 %v1157_v18, %v1160_v19  ;;  %v1180_v27 = vld [vmem:[%s1108_s23 + $0x68] sm:$0xff]  ;;  %v248_v28 = vadd.f32 %v1174_v25, %v1171_v24  ;;  %v256_v30 = vmax.f32 %v1171_v24, %v1174_v25  ;;  %s1273_s23 = scalar_lea.vmem %s1315_s5, %s895_s20 }
  0x16   : > { %v247_v29 = vadd.f32 %v1180_v27, %v1177_v26  ;;  %v255_v31 = vmax.f32 %v1177_v26, %v1180_v27 }
  0x17   : > { %275 = vmax.xlane.f32.xlu1 %v250_v6  ;;  %259 = vadd.xlane.f32.xlu0 %v242_v7 }
  0x1b   : > { %263 = vadd.xlane.f32.xlu1 %v244_v12  ;;  %261 = vadd.xlane.f32.xlu0 %v243_v13 }
  0x1f   : > { %279 = vmax.xlane.f32.xlu1 %v252_v14  ;;  %277 = vmax.xlane.f32.xlu0 %v251_v15 }
  0x23   : > { %267 = vadd.xlane.f32.xlu1 %v246_v20  ;;  %265 = vadd.xlane.f32.xlu0 %v245_v21 }
  0x27   : > { %283 = vmax.xlane.f32.xlu1 %v254_v22  ;;  %281 = vmax.xlane.f32.xlu0 %v253_v23 }
  0x2b   : > { %271 = vadd.xlane.f32.xlu1 %v248_v28  ;;  %269 = vadd.xlane.f32.xlu0 %v247_v29 }
  0x2f   : > { %287 = vmax.xlane.f32.xlu1 %v256_v30  ;;  %285 = vmax.xlane.f32.xlu0 %v255_v31 }
  0x40   : > { %333 = vperm.xlu1 %986, %v300_v33   ;;  %v301_v33 = vld [vmem:[%s1313_s3] sm:$0xff] }
  0x41   : > { %940 = vmatprep.mubr.msk.f32.mxu1 %vm460_vm2, %v301_v33 }
  0x44   : > { %422 = vperm.xlu1 %986, %v309_v36  }
  0x45   : > { %328 = vperm.xlu0 %985, %v299_v35  }
  0x48   : > { %427 = vperm.xlu1 %986, %v310_v38  }
  0x49   : > { %457 = vperm.xlu0 %985, %v316_v37  }
  0x4c   : > { %432 = vperm.xlu1 %986, %v311_v39  }
  0x50   : > { %437 = vperm.xlu1 %986, %v312_v40  }
  0x54   : > { %442 = vperm.xlu1 %986, %v313_v41  }
  0x58   : > { %447 = vperm.xlu1 %986, %v314_v42  }
  0x5c   : > { %452 = vperm.xlu1 %986, %v315_v43   ;;  %v302_v43 = vld [vmem:[%s1313_s3 + $0x8] sm:$0xff] }
  0xa0   : > { %v274_v44 = vpop.xlane.xlu1 %273  ;;  %v258_v45 = vpop.xlane.xlu0 %257 }
  0xa1   : > { %v289_v46 = vmul.f32 0.00390625, %v258_v45  ;;  %v304_v45 = vld [vmem:[%s1313_s3 + $0x18] sm:$0xff] }
  0xa3   : > { %v318_v50 = vsel %vm317_vm1, %v289_v46, %v274_v44  ;;  %v303_v44 = vld [vmem:[%s1313_s3 + $0x10] sm:$0xff]  ;;  %v305_v46 = vld [vmem:[%s1313_s3 + $0x20] sm:$0xff] }
  0xa4   : > { %v276_v47 = vpop.xlane.xlu1 %275  ;;  %v260_v48 = vpop.xlane.xlu0 %259 }
  0xa5   : > { %v290_v49 = vmul.f32 0.00390625, %v260_v48  ;;  %v307_v48 = vld [vmem:[%s1313_s3 + $0x30] sm:$0xff] }
  0xa7   : > { %v319_v51 = vsel %vm317_vm1, %v290_v49, %v276_v47  ;;  %v306_v47 = vld [vmem:[%s1313_s3 + $0x28] sm:$0xff]  ;;  %v308_v49 = vld [vmem:[%s1313_s3 + $0x38] sm:$0xff] }
  0xa8   : > { %v264_v52 = vpop.xlane.xlu1 %263  ;;  %v262_v53 = vpop.xlane.xlu0 %261  ;;  %v952_v54 = vpack.c.bf16 %v319_v51, %v318_v50 }
  0xa9   : > { %v292_v55 = vmul.f32 0.00390625, %v264_v52  ;;  %v291_v56 = vmul.f32 0.00390625, %v262_v53 }
  0xaa   : > { %953 = vmatprep.subr.bf16.mxu0 %v952_v54 }
  0xab   : > { %955 = vmatpush3.bf16.msra.mxu0 %v952_v54 }
  0xac   : > { %v280_v57 = vpop.xlane.xlu1 %279  ;;  %v278_v58 = vpop.xlane.xlu0 %277 }
  0xad   : > { %v321_v59 = vsel %vm317_vm1, %v292_v55, %v280_v57  ;;  %v320_v60 = vsel %vm317_vm1, %v291_v56, %v278_v58 }
  0xae   : > { %v956_v61 = vpack.c.bf16 %v321_v59, %v320_v60 }
  0xb0   : > { %v268_v62 = vpop.xlane.xlu1 %267  ;;  %957 = vmatprep.subr.bf16.mxu0 %v956_v61  ;;  %v266_v63 = vpop.xlane.xlu0 %265 }
  0xb1   : > { %959 = vmatpush3.bf16.msra.mxu0 %v956_v61  ;;  %v294_v3 = vmul.f32 0.00390625, %v268_v62  ;;  %v293_v4 = vmul.f32 0.00390625, %v266_v63 }
  0xb4   : > { %v284_v6 = vpop.xlane.xlu1 %283  ;;  %v282_v7 = vpop.xlane.xlu0 %281 }
  0xb5   : > { %v323_v12 = vsel %vm317_vm1, %v294_v3, %v284_v6  ;;  %v322_v13 = vsel %vm317_vm1, %v293_v4, %v282_v7 }
  0xb6   : > { %v960_v14 = vpack.c.bf16 %v323_v12, %v322_v13 }
  0xb8   : > { %v272_v15 = vpop.xlane.xlu1 %271  ;;  %961 = vmatprep.subr.bf16.mxu0 %v960_v14  ;;  %v270_v20 = vpop.xlane.xlu0 %269 }
  0xb9   : > { %963 = vmatpush3.bf16.msra.mxu0 %v960_v14  ;;  %v296_v21 = vmul.f32 0.00390625, %v272_v15  ;;  %v295_v22 = vmul.f32 0.00390625, %v270_v20 }
  0xbc   : > { %v288_v23 = vpop.xlane.xlu1 %287  ;;  %v286_v28 = vpop.xlane.xlu0 %285 }
  0xbd   : > { %v325_v29 = vsel %vm317_vm1, %v296_v21, %v288_v23  ;;  %v324_v30 = vsel %vm317_vm1, %v295_v22, %v286_v28 }
  0xbe   : > { %v964_v31 = vpack.c.bf16 %v325_v29, %v324_v30 }
  0xc0   : > { %965 = vmatprep.subr.bf16.mxu0 %v964_v31  ;;  %v334_v34 = vpop.permute.xlu1 %333 }
  0xc1   : > { %967 = vmatpush3.bf16.msra.mxu0 %v964_v31 }
  0xc4   : > { %934 = vmatmul.mubr.msk.f32.vlgmr.msra.gmra.mrb[0].mxu0 %vm336_vm0, %v298_v32  ;;  %v329_v36 = vpop.permute.xlu0 %328  ;;  %v423_v50 = vpop.permute.xlu1 %422 }
  0xc8   : > { %v428_v51 = vpop.permute.xlu1 %427  ;;  %v458_v21 = vpop.permute.xlu0 %457 }
  0xcc   : > { %v433_v52 = vpop.permute.xlu1 %432 }
  0xd0   : > { %v438_v53 = vpop.permute.xlu1 %437 }
  0xd4   : > { %v443_v55 = vpop.permute.xlu1 %442 }
  0xd8   : > { %v448_v4 = vpop.permute.xlu1 %447 }
  0xdc   : > { %v453_v28 = vpop.permute.xlu1 %452 }
 0x197   : > { %v935_v35 = vpop.f32.mrb[0].mxu0 }
 0x198   : > { %v415_v37 = vadd.f32 %v935_v35, %v334_v34  ;;  %v409_v38 = vpop.f32.mrb[1].mxu0 }
 0x199   : > { %v410_v39 = vadd.f32 %v409_v38, %v329_v36 }
 0x19a   : > { %v419_v40 = vmax.f32 %v415_v37, 0.0 }
 0x19b   : > { %v418_v41 = vmax.f32 %v410_v39, 0.0 }
 0x19d   : > { %v968_v42 = vpack.c.bf16 %v419_v40, %v418_v41 }
 0x19f   : > { %970 = vmatprep.subr.msk.bf16.mxu1 %vm969_vm5, %v968_v42 }
 0x1a0   : > { %973 = vmatpush3.bf16.msk.msra.mxu1 %vm969_vm5, %v968_v42 }
 0x1a3   : > { %941 = vmatmul.mubr.msk.f32.vlgmr.msra.gmra.mrb[0].mxu1 %vm460_vm2, %v302_v43 }
 0x1a4   : > { %943 = vmatprep.mubr.msk.f32.mxu1 %vm460_vm2, %v303_v44 }
 0x1a7   : > { %944 = vmatmul.mubr.msk.f32.gmra.mrb[2].mxu1 %vm460_vm2, %v304_v45 }
 0x1a8   : > { %946 = vmatprep.mubr.msk.f32.mxu1 %vm460_vm2, %v305_v46 }
 0x1ab   : > { %947 = vmatmul.mubr.msk.f32.gmra.mrb[4].mxu1 %vm460_vm2, %v306_v47 }
 0x1ac   : > { %949 = vmatprep.mubr.msk.f32.mxu1 %vm460_vm2, %v307_v48 }
 0x1af   : > { %950 = vmatmul.mubr.msk.f32.gmra.mrb[6].mxu1 %vm460_vm2, %v308_v49 }
 0x276   : > { %v942_v54 = vpop.f32.mrb[0].mxu1 }
 0x277   : > { %v561_v56 = vadd.f32 %v942_v54, %v428_v51  ;;  %v555_v57 = vpop.f32.mrb[1].mxu1 }
 0x278   : > { %v556_v58 = vadd.f32 %v555_v57, %v423_v50 }
 0x279   : > { %v878_v59 = vmul.f32 -1.442695, %v561_v56 }
 0x27a   : > { %v877_v60 = vmul.f32 -1.442695, %v556_v58  ;;  %v945_v61 = vpop.f32.mrb[2].mxu1 }
 0x27b   : > { %987 = vpow2.f32 %v878_v59  ;;  %v571_v62 = vadd.f32 %v945_v61, %v438_v53  ;;  %v565_v63 = vpop.f32.mrb[3].mxu1 }
 0x27c   : > { %989 = vpow2.f32 %v877_v60  ;;  %v566_v3 = vadd.f32 %v565_v63, %v433_v52 }
 0x27d   : > { %v880_v6 = vmul.f32 -1.442695, %v571_v62 }
 0x27e   : > { %v879_v7 = vmul.f32 -1.442695, %v566_v3  ;;  %v948_v12 = vpop.f32.mrb[4].mxu1 }
 0x27f   : > { %991 = vpow2.f32 %v880_v6  ;;  %v581_v13 = vadd.f32 %v948_v12, %v448_v4  ;;  %v575_v14 = vpop.f32.mrb[5].mxu1 }
 0x280   : > { %993 = vpow2.f32 %v879_v7  ;;  %v576_v15 = vadd.f32 %v575_v14, %v443_v55 }
 0x281   : > { %v882_v20 = vmul.f32 -1.442695, %v581_v13 }
 0x282   : > { %v881_v22 = vmul.f32 -1.442695, %v576_v15  ;;  %v951_v23 = vpop.f32.mrb[6].mxu1 }
 0x283   : > { %995 = vpow2.f32 %v882_v20  ;;  %v591_v29 = vadd.f32 %v951_v23, %v458_v21  ;;  %v585_v30 = vpop.f32.mrb[7].mxu1 }
 0x284   : > { %997 = vpow2.f32 %v881_v22  ;;  %v586_v31 = vadd.f32 %v585_v30, %v453_v28 }
 0x285   : > { %v988_v32 = vpop.eup %987  ;;  %v884_v33 = vmul.f32 -1.442695, %v591_v29 }
 0x286   : > { %v990_v34 = vpop.eup %989  ;;  %v619_v35 = vadd.f32 1.0, %v988_v32  ;;  %v883_v36 = vmul.f32 -1.442695, %v586_v31 }
 0x287   : > { %v618_v37 = vadd.f32 1.0, %v990_v34  ;;  %999 = vpow2.f32 %v884_v33 }
 0x288   : > { %1001 = vrcp.f32 %v619_v35 }
 0x289   : > { %v992_v38 = vpop.eup %991  ;;  %1003 = vrcp.f32 %v618_v37 }
 0x28a   : > { %v994_v39 = vpop.eup %993  ;;  %v621_v40 = vadd.f32 1.0, %v992_v38  ;;  %1005 = vpow2.f32 %v883_v36 }
 0x28b   : > { %v620_v41 = vadd.f32 1.0, %v994_v39 }
 0x28c   : > { %1007 = vrcp.f32 %v621_v40 }
 0x28d   : > { %v996_v42 = vpop.eup %995  ;;  %1009 = vrcp.f32 %v620_v41 }
 0x28e   : > { %v998_v43 = vpop.eup %997  ;;  %v623_v44 = vadd.f32 1.0, %v996_v42 }
 0x28f   : > { %v622_v45 = vadd.f32 1.0, %v998_v43 }
 0x290   : > { %1011 = vrcp.f32 %v623_v44 }
 0x291   : > { %v1000_v46 = vpop.eup %999  ;;  %1013 = vrcp.f32 %v622_v45 }
 0x292   : > { %v1002_v47 = vpop.eup %1001  ;;  %v625_v48 = vadd.f32 1.0, %v1000_v46 }
 0x293   : > { %v1004_v49 = vpop.eup %1003  ;;  %652 = vrot.lane.b32.xlu0 %v1002_v47, %s1061_s17 }
 0x294   : > { %v1006_v50 = vpop.eup %1005  ;;  %1015 = vrcp.f32 %v625_v48  ;;  %650 = vrot.lane.b32.xlu1 %v1004_v49, %s1061_s17 }
 0x295   : > { %v624_v51 = vadd.f32 1.0, %v1006_v50 }
 0x296   : > { %v1008_v52 = vpop.eup %1007 }
 0x297   : > { %v1010_v53 = vpop.eup %1009  ;;  %1017 = vrcp.f32 %v624_v51  ;;  %656 = vrot.lane.b32.xlu0 %v1008_v52, %s1061_s17 }
 0x298   : > { %654 = vrot.lane.b32.xlu1 %v1010_v53, %s1061_s17 }
 0x29a   : > { %v1012_v54 = vpop.eup %1011 }
 0x29b   : > { %v1014_v55 = vpop.eup %1013  ;;  %660 = vrot.lane.b32.xlu0 %v1012_v54, %s1061_s17 }
 0x29c   : > { %658 = vrot.lane.b32.xlu1 %v1014_v55, %s1061_s17 }
 0x29e   : > { %v1016_v56 = vpop.eup %1015 }
 0x29f   : > { %664 = vrot.lane.b32.xlu0 %v1016_v56, %s1061_s17 }
 0x2a1   : > { %v1018_v57 = vpop.eup %1017 }
 0x2a2   : > { %662 = vrot.lane.b32.xlu1 %v1018_v57, %s1061_s17 }
 0x305   : > { %v653_v58 = vpop.permute.xlu0 %652 }
 0x306   : > { %v675_v59 = vadd.f32 %v1002_v47, %v653_v58  ;;  %v651_v60 = vpop.permute.xlu1 %650 }
 0x307   : > { %v674_v61 = vadd.f32 %v1004_v49, %v651_v60 }
 0x308   : > { %v886_v62 = vmul.f32 -1.442695, %v675_v59 }
 0x309   : > { %v885_v63 = vmul.f32 -1.442695, %v674_v61  ;;  %v657_v3 = vpop.permute.xlu0 %656 }
 0x30a   : > { %1019 = vpow2.f32 %v886_v62  ;;  %v677_v4 = vadd.f32 %v1008_v52, %v657_v3  ;;  %v655_v6 = vpop.permute.xlu1 %654 }
 0x30b   : > { %1021 = vpow2.f32 %v885_v63  ;;  %v676_v7 = vadd.f32 %v1010_v53, %v655_v6 }
 0x30c   : > { %v888_v12 = vmul.f32 -1.442695, %v677_v4 }
 0x30d   : > { %v887_v13 = vmul.f32 -1.442695, %v676_v7  ;;  %v661_v14 = vpop.permute.xlu0 %660 }
 0x30e   : > { %1023 = vpow2.f32 %v888_v12  ;;  %v679_v15 = vadd.f32 %v1012_v54, %v661_v14  ;;  %v659_v20 = vpop.permute.xlu1 %658 }
 0x30f   : > { %1025 = vpow2.f32 %v887_v13  ;;  %v678_v21 = vadd.f32 %v1014_v55, %v659_v20 }
 0x310   : > { %v890_v22 = vmul.f32 -1.442695, %v679_v15 }
 0x311   : > { %v889_v23 = vmul.f32 -1.442695, %v678_v21  ;;  %v665_v28 = vpop.permute.xlu0 %664 }
 0x312   : > { %1027 = vpow2.f32 %v890_v22  ;;  %v681_v29 = vadd.f32 %v1016_v56, %v665_v28 }
 0x313   : > { %1029 = vpow2.f32 %v889_v23 }
 0x314   : > { %v1020_v30 = vpop.eup %1019  ;;  %v892_v31 = vmul.f32 -1.442695, %v681_v29  ;;  %v663_v32 = vpop.permute.xlu1 %662 }
 0x315   : > { %v1022_v33 = vpop.eup %1021  ;;  %v707_v34 = vadd.f32 1.0, %v1020_v30  ;;  %v680_v35 = vadd.f32 %v1018_v57, %v663_v32 }
 0x316   : > { %v706_v36 = vadd.f32 1.0, %v1022_v33  ;;  %1031 = vpow2.f32 %v892_v31 }
 0x317   : > { %1033 = vrcp.f32 %v707_v34  ;;  %v891_v37 = vmul.f32 -1.442695, %v680_v35 }
 0x318   : > { %v1024_v38 = vpop.eup %1023  ;;  %1035 = vrcp.f32 %v706_v36 }
 0x319   : > { %v1026_v39 = vpop.eup %1025  ;;  %v709_v40 = vadd.f32 1.0, %v1024_v38  ;;  %1037 = vpow2.f32 %v891_v37 }
 0x31a   : > { %v708_v41 = vadd.f32 1.0, %v1026_v39 }
 0x31b   : > { %1039 = vrcp.f32 %v709_v40 }
 0x31c   : > { %v1028_v42 = vpop.eup %1027  ;;  %1041 = vrcp.f32 %v708_v41 }
 0x31d   : > { %v1030_v43 = vpop.eup %1029  ;;  %v711_v44 = vadd.f32 1.0, %v1028_v42 }
 0x31e   : > { %v710_v45 = vadd.f32 1.0, %v1030_v43 }
 0x31f   : > { %1043 = vrcp.f32 %v711_v44 }
 0x320   : > { %v1032_v46 = vpop.eup %1031  ;;  %1045 = vrcp.f32 %v710_v45 }
 0x321   : > { %v1034_v47 = vpop.eup %1033  ;;  %v713_v48 = vadd.f32 1.0, %v1032_v46 }
 0x322   : > { %v1036_v49 = vpop.eup %1035  ;;  %737 = vperm.xlu0 %985, %v1034_v47  }
 0x323   : > { %v1038_v50 = vpop.eup %1037  ;;  %1047 = vrcp.f32 %v713_v48  ;;  %732 = vperm.xlu1 %986, %v1036_v49  }
 0x324   : > { %v712_v51 = vadd.f32 1.0, %v1038_v50 }
 0x325   : > { %v1040_v52 = vpop.eup %1039 }
 0x326   : > { %v1042_v53 = vpop.eup %1041  ;;  %1049 = vrcp.f32 %v712_v51  ;;  %747 = vperm.xlu0 %985, %v1040_v52  }
 0x327   : > { %742 = vperm.xlu1 %986, %v1042_v53  }
 0x329   : > { %v1044_v54 = vpop.eup %1043 }
 0x32a   : > { %v1046_v55 = vpop.eup %1045  ;;  %757 = vperm.xlu0 %985, %v1044_v54  }
 0x32b   : > { %752 = vperm.xlu1 %986, %v1046_v55  }
 0x32d   : > { %v1048_v56 = vpop.eup %1047 }
 0x32e   : > { %767 = vperm.xlu0 %985, %v1048_v56  }
 0x330   : > { %v1050_v57 = vpop.eup %1049 }
 0x331   : > { %762 = vperm.xlu1 %986, %v1050_v57  }
 0x3a1   : > { %v738_v58 = vpop.permute.xlu0 %737 }
 0x3a2   : > { %v772_v59 = vmul.f32 %v738_v58, %v1117_v2  ;;  %v773_v60 = vmul.f32 %v738_v58, %v1124_v5  ;;  %v733_v61 = vpop.permute.xlu1 %732 }
 0x3a3   : > { %v770_v62 = vmul.f32 %v733_v61, %v1111_v0  ;;  %v771_v63 = vmul.f32 %v733_v61, %v1114_v1 }
 0x3a4   : > { %788 = vst [vmem:[%s1273_s23 + $0x10] sm:$0xff] %v772_v59  ;;  %789 = vst [vmem:[%s1273_s23 + $0x18] sm:$0xff] %v773_v60 }
 0x3a5   : > { %786 = vst [vmem:[%s1273_s23] sm:$0xff] %v770_v62  ;;  %787 = vst [vmem:[%s1273_s23 + $0x8] sm:$0xff] %v771_v63  ;;  %v748_v3 = vpop.permute.xlu0 %747 }
 0x3a6   : > { %v776_v4 = vmul.f32 %v748_v3, %v1131_v8  ;;  %v777_v2 = vmul.f32 %v748_v3, %v1134_v9  ;;  %v743_v5 = vpop.permute.xlu1 %742 }
 0x3a7   : > { %v774_v6 = vmul.f32 %v743_v5, %v1137_v10  ;;  %v775_v0 = vmul.f32 %v743_v5, %v1140_v11 }
 0x3a8   : > { %792 = vst [vmem:[%s1273_s23 + $0x30] sm:$0xff] %v776_v4  ;;  %793 = vst [vmem:[%s1273_s23 + $0x38] sm:$0xff] %v777_v2 }
 0x3a9   : > { %790 = vst [vmem:[%s1273_s23 + $0x20] sm:$0xff] %v774_v6  ;;  %791 = vst [vmem:[%s1273_s23 + $0x28] sm:$0xff] %v775_v0  ;;  %v758_v1 = vpop.permute.xlu0 %757 }
 0x3aa   : > { %v780_v7 = vmul.f32 %v758_v1, %v1151_v16  ;;  %v781_v8 = vmul.f32 %v758_v1, %v1154_v17  ;;  %v753_v9 = vpop.permute.xlu1 %752 }
 0x3ab   : > { %v778_v12 = vmul.f32 %v753_v9, %v1157_v18  ;;  %v779_v10 = vmul.f32 %v753_v9, %v1160_v19 }
 0x3ac   : > { %796 = vst [vmem:[%s1273_s23 + $0x50] sm:$0xff] %v780_v7  ;;  %797 = vst [vmem:[%s1273_s23 + $0x58] sm:$0xff] %v781_v8 }
 0x3ad   : > { %794 = vst [vmem:[%s1273_s23 + $0x40] sm:$0xff] %v778_v12  ;;  %795 = vst [vmem:[%s1273_s23 + $0x48] sm:$0xff] %v779_v10  ;;  %v768_v11 = vpop.permute.xlu0 %767 }
 0x3ae   : > { %v784_v13 = vmul.f32 %v768_v11, %v1171_v24  ;;  %v785_v14 = vmul.f32 %v768_v11, %v1174_v25 }
 0x3b0   : > { %800 = vst [vmem:[%s1273_s23 + $0x70] sm:$0xff] %v784_v13  ;;  %801 = vst [vmem:[%s1273_s23 + $0x78] sm:$0xff] %v785_v14  ;;  %v763_v16 = vpop.permute.xlu1 %762 }
 0x3b1   : > { %v782_v17 = vmul.f32 %v763_v16, %v1177_v26  ;;  %v783_v15 = vmul.f32 %v763_v16, %v1180_v27 }
 0x3b3   : > { %798 = vst [vmem:[%s1273_s23 + $0x60] sm:$0xff] %v782_v17  ;;  %799 = vst [vmem:[%s1273_s23 + $0x68] sm:$0xff] %v783_v15 }
 0x3b4 PF: > { %s15_s18 = sadd.s32 1, %s1057_s18  }
 0x3b5   : > { %p12_p4 = scmp.ge.s32.totalorder %s15_s18, 4  }
 0x3b7   :  { %14 = sbr.rel (!%p12_p4) target bundleno = 1 (0x1), region = 70 }

</bundles_post_ra>
